<compile_context>
chip_gen: v6e
topology: v6e:2x2x1
jax: 0.10.0
libtpu: 0.0.40
codegen_flags: <defaults>
</compile_context>

<pallas_src>
import jax
import jax.numpy as jnp
from jax.experimental import pallas as pl
from jax.experimental.pallas import tpu as pltpu


# ---------------------------------------------------------------------------
# Kernel 1: combined projection slab
#   combined = alpha*x + Ls @ (-alpha*Ws) + Lg @ Wg + (bg - alpha*bs)
#            = alpha*(x - seasonal) + growth
# ---------------------------------------------------------------------------
def projection_kernel(alpha_ref, x_ref, ls_ref, lg_ref, ws_ref, wg_ref, b_ref,
                      comb_ref):
    alpha = alpha_ref[0]                                   # SMEM f32 scalar
    seas = jnp.dot(ls_ref[...].astype(jnp.bfloat16), ws_ref[...],
                   preferred_element_type=jnp.float32)     # (-alpha*Ws) folded in
    grow = jnp.dot(lg_ref[...].astype(jnp.bfloat16), wg_ref[...],
                   preferred_element_type=jnp.float32)
    comb = alpha * x_ref[...] + seas + grow + b_ref[...]
    comb_ref[...] = comb.astype(comb_ref.dtype)


# ---------------------------------------------------------------------------
# Kernel 2: causal exponential smoothing as tiled lower-triangular matmuls.
#   out[r,:] = sum_{c<=r} (1-alpha)^(r-c) * combined[c,:]
# Decay blocks are precomputed constants:
#   diag[r,c] = (1-a)^(r-c) (r>=c else 0)      -> the k == i block
#   base[r,c] = (1-a)^(tile + r - c)           -> any k < i block, times
#   offscale[m] = (1-a)^(m*tile)                  a scalar for the extra offset
# ---------------------------------------------------------------------------
def smoothing_kernel(offscale_ref, diag_ref, base_ref, comb_ref, o_ref):
    i = pl.program_id(0)          # output row tile (time)
    k = pl.program_id(2)          # contraction tile (time)

    @pl.when(k == 0)
    def _init():
        o_ref[...] = jnp.zeros_like(o_ref)

    @pl.when(k < i)               # strictly-lower off-diagonal blocks
    def _off_diag():
        partial = jnp.dot(base_ref[...], comb_ref[...],
                          preferred_element_type=jnp.float32)
        o_ref[...] += offscale_ref[i - k - 1] * partial    # f32 scalar scale

    @pl.when(k == i)              # diagonal (masked) block
    def _diag():
        o_ref[...] += jnp.dot(diag_ref[...], comb_ref[...],
                              preferred_element_type=jnp.float32)
    # k > i: contributes nothing; index_map clamp means no DMA was issued.


# ---------------------------------------------------------------------------
# Tiling helpers
# ---------------------------------------------------------------------------
def _round_up(x, m):
    return ((x + m - 1) // m) * m


def _pick_div_tile(total, target):
    """Largest multiple-of-16 (then -8) divisor of `total` <= target, else full."""
    for mult in (16, 8):
        t = min((total // mult) * mult, (target // mult) * mult)
        while t >= mult:
            if total % t == 0:
                return t
            t -= mult
    return total


def _pick_pad_tile(total, target, mult=16):
    """(tile, padded_total): tile is a multiple of `mult`; pad instead of
    falling back to the full extent when no divisor exists."""
    if total >= mult:
        t = min((total // mult) * mult, (target // mult) * mult)
        while t >= mult:
            if total % t == 0:
                return t, total
            t -= mult
    tile = max(mult, min((target // mult) * mult, _round_up(total, mult)))
    return tile, _round_up(total, tile)


def _pick_lane_tile(lanes_pad, target=2048):
    """Multiple-of-128 divisor of lanes_pad (lanes_pad is already 128-aligned)."""
    if lanes_pad <= target:
        return lanes_pad
    t = (target // 128) * 128
    while t >= 128:
        if lanes_pad % t == 0:
            return t
        t -= 128
    return lanes_pad


def _smoothing_tile_target():
    """MXU-matched LHS tile: 128 on v5e (4x128x128 MXU), 256 on v6e/v7x."""
    try:
        kind = jax.devices()[0].device_kind.lower()
    except Exception:
        return 128
    if "tpu" not in kind:
        return 128
    if "v5 lite" in kind or "v5e" in kind or "v5litepod" in kind:
        return 128
    return 256


# ---------------------------------------------------------------------------
# Wrapper
# ---------------------------------------------------------------------------
def level_forward(alpha_param, x, latent_growth, latent_seasonal,
                  w_growth, b_growth, w_seasonal, b_seasonal):
    """alpha_param: raw (pre-sigmoid) scalar parameter.
    Linear weights are stored pre-transposed as (d_model, time_features)."""
    B, n, tf = x.shape
    d_model = latent_growth.shape[-1]
    out_dtype = x.dtype
    lanes = B * tf

    raw = jnp.asarray(alpha_param, jnp.float32).reshape(())
    alpha = jax.nn.sigmoid(raw)
    log1ma = -jax.nn.softplus(raw)                 # log(1 - sigmoid(raw)), stable

    # Tiny parameter prep (d_model x tf): fold -alpha / combine biases in f32.
    ws_neg = (-alpha * w_seasonal.astype(jnp.float32)).astype(jnp.bfloat16)
    wg = w_growth.astype(jnp.bfloat16)
    bias = (b_growth.astype(jnp.float32)
            - alpha * b_seasonal.astype(jnp.float32)).reshape(1, tf)
    alpha_smem = alpha.astype(jnp.float32).reshape(1)

    # ---- Kernel 1: combined slab over flattened (B*n) rows (no transposes) --
    rows = B * n
    row_p = _pick_div_tile(rows, 256)
    x2 = x.reshape(rows, tf)
    ls2 = latent_seasonal.reshape(rows, d_model)
    lg2 = latent_growth.reshape(rows, d_model)

    comb2 = pl.pallas_call(
        projection_kernel,
        out_shape=jax.ShapeDtypeStruct((rows, tf), jnp.bfloat16),
        grid_spec=pltpu.PrefetchScalarGridSpec(
            num_scalar_prefetch=0,
            grid=(rows // row_p,),
            in_specs=[
                pl.BlockSpec(memory_space=pltpu.MemorySpace.SMEM),   # alpha
                pl.BlockSpec((row_p, tf), lambda j: (j, 0)),         # x
                pl.BlockSpec((row_p, d_model), lambda j: (j, 0)),    # latent_seasonal
                pl.BlockSpec((row_p, d_model), lambda j: (j, 0)),    # latent_growth
                pl.BlockSpec((d_model, tf), lambda j: (0, 0)),       # -alpha*W_seasonal
                pl.BlockSpec((d_model, tf), lambda j: (0, 0)),       # W_growth
                pl.BlockSpec((1, tf), lambda j: (0, 0)),             # combined bias
            ],
            out_specs=pl.BlockSpec((row_p, tf), lambda j: (j, 0)),
        ),
        compiler_params=pltpu.CompilerParams(dimension_semantics=("parallel",)),
    )(alpha_smem, x2, ls2, lg2, ws_neg, wg, bias)

    # Lane-dense slab for smoothing: (n, B*tf) padded to (n_pad, lanes_pad).
    # Only the small combined slab gets transposed/padded (cheap vs latents).
    slab = comb2.reshape(B, n, tf).transpose(1, 0, 2).reshape(n, lanes)

    target = _smoothing_tile_target()
    tile_n, n_pad = _pick_pad_tile(n, target)
    lanes_pad = max(_round_up(lanes, 128), 128)
    lane_tile = _pick_lane_tile(lanes_pad)
    if n_pad != n or lanes_pad != lanes:
        slab = jnp.zeros((n_pad, lanes_pad), slab.dtype).at[:n, :lanes].set(slab)

    n_tiles = n_pad // tile_n
    lane_tiles = lanes_pad // lane_tile

    # Precompute the constant decay blocks (tiny, built once in XLA).
    r = jnp.arange(tile_n, dtype=jnp.float32)[:, None]
    c = jnp.arange(tile_n, dtype=jnp.float32)[None, :]
    diag_block = jnp.where(r >= c, jnp.exp((r - c) * log1ma),
                           0.0).astype(jnp.bfloat16)
    base_block = jnp.exp((tile_n + r - c) * log1ma).astype(jnp.bfloat16)
    offscale = jnp.exp(jnp.arange(n_tiles, dtype=jnp.float32)
                       * (tile_n * log1ma)).astype(jnp.float32)

    out_slab = pl.pallas_call(
        smoothing_kernel,
        out_shape=jax.ShapeDtypeStruct((n_pad, lanes_pad), jnp.float32),
        grid_spec=pltpu.PrefetchScalarGridSpec(
            num_scalar_prefetch=0,
            grid=(n_tiles, lane_tiles, n_tiles),
            in_specs=[
                pl.BlockSpec(memory_space=pltpu.MemorySpace.SMEM),         # offscale
                pl.BlockSpec((tile_n, tile_n), lambda i, l, k: (0, 0)),    # diag
                pl.BlockSpec((tile_n, tile_n), lambda i, l, k: (0, 0)),    # base
                # clamp k to i: dead upper-triangular steps reuse the resident block
                pl.BlockSpec((tile_n, lane_tile),
                             lambda i, l, k: (jnp.minimum(k, i), l)),      # combined
            ],
            out_specs=pl.BlockSpec((tile_n, lane_tile), lambda i, l, k: (i, l)),
        ),
        compiler_params=pltpu.CompilerParams(
            dimension_semantics=("parallel", "parallel", "arbitrary")),
    )(offscale, diag_block, base_block, slab)

    out = out_slab[:n, :lanes].reshape(n, B, tf).transpose(1, 0, 2)
    return out.astype(out_dtype)


# ---------------------------------------------------------------------------
# Pure-JAX reference (f32) with the same semantics (causal exp-smoothing form).
# ---------------------------------------------------------------------------
def level_reference(alpha_param, x, latent_growth, latent_seasonal,
                    w_growth, b_growth, w_seasonal, b_seasonal):
    alpha = jax.nn.sigmoid(alpha_param)
    n = x.shape[1]
    k = jnp.arange(n)[:, None].astype(jnp.float32)
    j = jnp.arange(n)[None, :].astype(jnp.float32)
    delta = k - j
    decay = jnp.where(delta >= 0, (1.0 - alpha) ** jnp.maximum(delta, 0.0), 0.0)
    aes = alpha * decay
    seasonal = latent_seasonal @ w_seasonal + b_seasonal
    growth = latent_growth @ w_growth + b_growth
    seas_term = jnp.einsum('kj,bjf->bkf', aes, x - seasonal)
    growth_term = jnp.einsum('kj,bjf->bkf', decay, growth)
    return seas_term + growth_term


if __name__ == "__main__":
    B, n, time_features, d_model = 2, 8, 4, 32

    key = jax.random.PRNGKey(0)
    k1, k2, k3, k4, k5, k6, k7 = jax.random.split(key, 7)

    x = jax.random.normal(k1, (B, n, time_features), dtype=jnp.float32)
    latent_growth = jax.random.normal(k2, (B, n, d_model), dtype=jnp.float32)
    latent_seasonal = jax.random.normal(k3, (B, n, d_model), dtype=jnp.float32)

    # Module __init__: alpha = 0.0 (scalar), two Linear(d_model->time_features)
    # layers (weights stored pre-transposed as (d_model, time_features)).
    alpha_param = jnp.zeros((), dtype=jnp.float32)
    scale = 1.0 / jnp.sqrt(d_model)
    w_growth = jax.random.uniform(k4, (d_model, time_features),
                                  minval=-scale, maxval=scale, dtype=jnp.float32)
    b_growth = jax.random.uniform(k5, (time_features,),
                                  minval=-scale, maxval=scale, dtype=jnp.float32)
    w_seasonal = jax.random.uniform(k6, (d_model, time_features),
                                    minval=-scale, maxval=scale, dtype=jnp.float32)
    b_seasonal = jax.random.uniform(k7, (time_features,),
                                    minval=-scale, maxval=scale, dtype=jnp.float32)

    out = level_forward(alpha_param, x, latent_growth, latent_seasonal,
                        w_growth, b_growth, w_seasonal, b_seasonal)
    out = jax.block_until_ready(out)

    ref = level_reference(alpha_param, x, latent_growth, latent_seasonal,
                          w_growth, b_growth, w_seasonal, b_seasonal)
    assert out.shape == (B, n, time_features)
    # bf16 MXU operands (f32 accumulation, alpha / offset scaling kept in f32).
    assert jnp.allclose(out, ref, atol=2e-2, rtol=2e-2), \
        float(jnp.max(jnp.abs(out - ref)))

    print("KERNEL_OK")
</pallas_src>

<mosaic_0001>
module attributes {stable_mosaic.version = 11 : i64} {
  func.func @projection_kernel(%arg0: i32, %arg1: memref<1xf32, #tpu.memory_space<smem>>, %arg2: memref<16x4xf32, #tpu.memory_space<vmem>>, %arg3: memref<16x32xf32, #tpu.memory_space<vmem>>, %arg4: memref<16x32xf32, #tpu.memory_space<vmem>>, %arg5: memref<32x4xbf16, #tpu.memory_space<vmem>>, %arg6: memref<32x4xbf16, #tpu.memory_space<vmem>>, %arg7: memref<1x4xf32, #tpu.memory_space<vmem>>, %arg8: memref<16x4xbf16, #tpu.memory_space<vmem>>) attributes {dimension_semantics = [#tpu.dimension_semantics<parallel>], iteration_bounds = array<i64: 1>, scalar_prefetch = 0 : i64, scratch_operands = 0 : i64, tpu.core_type = #tpu.core_type<tc>, window_params = [{transform_indices = @transform_0, window_bounds = array<i64: 1>}, {transform_indices = @transform_1, window_bounds = array<i64: 16, 4>}, {transform_indices = @transform_2, window_bounds = array<i64: 16, 32>}, {transform_indices = @transform_3, window_bounds = array<i64: 16, 32>}, {pipeline_mode = #tpu.pipeline_mode<synchronous>, transform_indices = @transform_4, window_bounds = array<i64: 32, 4>}, {pipeline_mode = #tpu.pipeline_mode<synchronous>, transform_indices = @transform_5, window_bounds = array<i64: 32, 4>}, {pipeline_mode = #tpu.pipeline_mode<synchronous>, transform_indices = @transform_6, window_bounds = array<i64: 1, 4>}, {transform_indices = @transform_7, window_bounds = array<i64: 16, 4>}]} {
    %c0 = arith.constant 0 : index
    %0 = memref.load %arg1[%c0] : memref<1xf32, #tpu.memory_space<smem>>
    %c0_0 = arith.constant 0 : index
    %c0_1 = arith.constant 0 : index
    %1 = vector.load %arg3[%c0_0, %c0_1] : memref<16x32xf32, #tpu.memory_space<vmem>>, vector<16x32xf32>
    %2 = arith.truncf %1 : vector<16x32xf32> to vector<16x32xbf16>
    %c0_2 = arith.constant 0 : index
    %c0_3 = arith.constant 0 : index
    %3 = vector.load %arg5[%c0_2, %c0_3] : memref<32x4xbf16, #tpu.memory_space<vmem>>, vector<32x4xbf16>
    %cst = arith.constant dense<0.000000e+00> : vector<16x4xf32>
    %4 = tpu.matmul %2, %3, %cst {dimension_numbers = #tpu.dot_dimension_numbers<[1], [0], [0], [1], [0, 0, 1, 1], [], []>} : vector<16x32xbf16>, vector<32x4xbf16>, vector<16x4xf32> -> vector<16x4xf32>
    %c0_4 = arith.constant 0 : index
    %c0_5 = arith.constant 0 : index
    %5 = vector.load %arg4[%c0_4, %c0_5] : memref<16x32xf32, #tpu.memory_space<vmem>>, vector<16x32xf32>
    %6 = arith.truncf %5 : vector<16x32xf32> to vector<16x32xbf16>
    %c0_6 = arith.constant 0 : index
    %c0_7 = arith.constant 0 : index
    %7 = vector.load %arg6[%c0_6, %c0_7] : memref<32x4xbf16, #tpu.memory_space<vmem>>, vector<32x4xbf16>
    %cst_8 = arith.constant dense<0.000000e+00> : vector<16x4xf32>
    %8 = tpu.matmul %6, %7, %cst_8 {dimension_numbers = #tpu.dot_dimension_numbers<[1], [0], [0], [1], [0, 0, 1, 1], [], []>} : vector<16x32xbf16>, vector<32x4xbf16>, vector<16x4xf32> -> vector<16x4xf32>
    %c0_9 = arith.constant 0 : index
    %c0_10 = arith.constant 0 : index
    %9 = vector.load %arg2[%c0_9, %c0_10] : memref<16x4xf32, #tpu.memory_space<vmem>>, vector<16x4xf32>
    %10 = vector.broadcast %0 : f32 to vector<16x4xf32>
    %11 = arith.mulf %10, %9 : vector<16x4xf32>
    %12 = arith.addf %11, %4 : vector<16x4xf32>
    %13 = arith.addf %12, %8 : vector<16x4xf32>
    %c0_11 = arith.constant 0 : index
    %c0_12 = arith.constant 0 : index
    %14 = vector.load %arg7[%c0_11, %c0_12] : memref<1x4xf32, #tpu.memory_space<vmem>>, vector<1x4xf32>
    %15 = vector.broadcast %14 : vector<1x4xf32> to vector<16x4xf32>
    %16 = arith.addf %13, %15 : vector<16x4xf32>
    %17 = arith.truncf %16 : vector<16x4xf32> to vector<16x4xbf16>
    %c0_13 = arith.constant 0 : index
    %c0_14 = arith.constant 0 : index
    %18 = vector.load %arg8[%c0_13, %c0_14] : memref<16x4xbf16, #tpu.memory_space<vmem>>, vector<16x4xbf16>
    tpu.vector_store %arg8[%c0_13, %c0_14], %17 {strides = array<i32>} : memref<16x4xbf16, #tpu.memory_space<vmem>>, vector<16x4xbf16>,
    return
  }
  func.func @transform_0(%arg0: i32) -> i32 {
    %c0_i32 = arith.constant 0 : i32
    %c0_i32_0 = arith.constant 0 : i32
    return %c0_i32 : i32
  }
  func.func @transform_1(%arg0: i32) -> (i32, i32) {
    %c0_i32 = arith.constant 0 : i32
    %c0_i32_0 = arith.constant 0 : i32
    return %arg0, %c0_i32 : i32, i32
  }
  func.func @transform_2(%arg0: i32) -> (i32, i32) {
    %c0_i32 = arith.constant 0 : i32
    %c0_i32_0 = arith.constant 0 : i32
    return %arg0, %c0_i32 : i32, i32
  }
  func.func @transform_3(%arg0: i32) -> (i32, i32) {
    %c0_i32 = arith.constant 0 : i32
    %c0_i32_0 = arith.constant 0 : i32
    return %arg0, %c0_i32 : i32, i32
  }
  func.func @transform_4(%arg0: i32) -> (i32, i32) {
    %c0_i32 = arith.constant 0 : i32
    %c0_i32_0 = arith.constant 0 : i32
    %c0_i32_1 = arith.constant 0 : i32
    return %c0_i32, %c0_i32_0 : i32, i32
  }
  func.func @transform_5(%arg0: i32) -> (i32, i32) {
    %c0_i32 = arith.constant 0 : i32
    %c0_i32_0 = arith.constant 0 : i32
    %c0_i32_1 = arith.constant 0 : i32
    return %c0_i32, %c0_i32_0 : i32, i32
  }
  func.func @transform_6(%arg0: i32) -> (i32, i32) {
    %c0_i32 = arith.constant 0 : i32
    %c0_i32_0 = arith.constant 0 : i32
    %c0_i32_1 = arith.constant 0 : i32
    return %c0_i32, %c0_i32_0 : i32, i32
  }
  func.func @transform_7(%arg0: i32) -> (i32, i32) {
    %c0_i32 = arith.constant 0 : i32
    %c0_i32_0 = arith.constant 0 : i32
    return %arg0, %c0_i32 : i32, i32
  }
}

</mosaic_0001>

<bundles_post_ra>
// kernel: tpu_custom_call.1
= control target key start
LH: loop header
LB: loop body
LE: loop exit
PB: predicated region body
PF: predicated region fallthrough
CT: control target
= control target key end

     0   :  { %v228_v0 = vmov 0.0   ;;  %vm229_vm0 = vmmov 0   ;;  %vm48_vm1 = vcmask 261120   ;;  %vm182_vm2 = vcmask 27648   ;;  %s312_s4 = inlined_call_operand.vmem [shape: bf16[32,4], index: 4, kind: input, shape index: {}]   ;;  %s313_s5 = inlined_call_operand.vmem [shape: bf16[32,4], index: 5, kind: input, shape index: {}]   ;;  %s314_s2 = inlined_call_operand.vmem [shape: f32[16,32], index: 2, kind: input, shape index: {}]   ;;  %s315_s3 = inlined_call_operand.vmem [shape: f32[16,32], index: 3, kind: input, shape index: {}]   ;;  %s316_s0 = inlined_call_operand.<no memory space> [shape: f32[1], index: 0, kind: input, shape index: {}]   ;;  %s317_s1 = inlined_call_operand.vmem [shape: f32[16,4], index: 1, kind: input, shape index: {}]   ;;  %s318_s6 = inlined_call_operand.vmem [shape: f32[1,4], index: 6, kind: input, shape index: {}]   ;;  %s319_s7 = inlined_call_operand.vmem [shape: bf16[16,4], index: 7, kind: output, shape index: {}]  }
   0x1   :  { %206 = vmatprep.subr.bf16.mxu0 %v228_v0  ;;  %214 = vmatprep.subr.bf16.mxu1 %v228_v0  ;;  %v224_v1 = vld [vmem:[%s312_s4 + $0x8] sm:$0xff]   ;;  %v226_v3 = vld [vmem:[%s312_s4] sm:$0xff]   ;;  %v158_v12 = vstv %s316_s0 }
   0x2   :  { %v225_v2 = vld [vmem:[%s313_s5 + $0x8] sm:$0xff]   ;;  %210 = vmatprep.mubr.msk.bf16.mxu0 %vm229_vm0, %v228_v0  ;;  %218 = vmatprep.mubr.msk.bf16.mxu1 %vm229_vm0, %v228_v0  ;;  %v227_v4 = vld [vmem:[%s313_s5] sm:$0xff]  }
   0x3   :  { %207 = vmatpush3.bf16.msra.mxu0 %v224_v1  ;;  %215 = vmatpush3.bf16.msra.mxu1 %v225_v2  ;;  %v29_v5 = vld [vmem:[%s314_s2] sm:$0xff]  ;;  %v30_v6 = vld [vmem:[%s314_s2 + $0x8] sm:$0xff] }
   0x4   :  { %208 = vmatprep.subr.bf16.mxu0 %v228_v0  ;;  %216 = vmatprep.subr.bf16.mxu1 %v228_v0  ;;  %v93_v7 = vld [vmem:[%s315_s3] sm:$0xff]  ;;  %v31_v8 = vpack.c.bf16 %v30_v6, %v29_v5  ;;  %v94_v9 = vld [vmem:[%s315_s3 + $0x8] sm:$0xff] }
   0x5   :  { %v95_v10 = vpack.c.bf16 %v94_v9, %v93_v7  ;;  %v156_v11 = vld [vmem:[%s317_s1] sm:$0xff]  ;;  %v157_v14 = vld [vmem:[%s317_s1 + $0x8] sm:$0xff] }
   0x6   :  { %v159_v13 = vmul.f32 %v158_v12, %v156_v11  ;;  %v160_v18 = vmul.f32 %v158_v12, %v157_v14  ;;  %v195_v19 = vld [vmem:[%s318_s6] ss:$0 sm:$0xff] }
   0x7   :  { %209 = vmatpush3.bf16.msra.mxu0 %v226_v3  ;;  %217 = vmatpush3.bf16.msra.mxu1 %v227_v4 }
   0xa   :  { %211 = vmatmul.mubr.msk.bf16.vlgmr.msra.gmra.mxu0 %vm48_vm1, %v31_v8  ;;  %219 = vmatmul.mubr.msk.bf16.vlgmr.msra.gmra.mxu1 %vm48_vm1, %v95_v10 }
  0xca   :  { %v86_v15 = vpop.f32.mrf.mxu0  ;;  %v149_v17 = vpop.f32.mrf.mxu1 }
  0xcb   :  { %v161_v16 = vadd.f32 %v159_v13, %v86_v15 }
  0xcc   :  { %v212_v20 = vpop.f32.mrf.mxu0  ;;  %v220_v22 = vpop.f32.mrf.mxu1 }
  0xcd   :  { %v163_v21 = vadd.f32 %v161_v16, %v149_v17 }
  0xce   :  { %v89_v23 = vpop.f32.mrf.mxu0  ;;  %v152_v26 = vpop.f32.mrf.mxu1 }
  0xcf   :  { %v172_v24 = vadd.f32 %v195_v19, %v163_v21  ;;  %v162_v25 = vadd.f32 %v160_v18, %v89_v23 }
  0xd0   :  { %v213_v27 = vpop.f32.mrf.mxu0  ;;  %v221_v30 = vpop.f32.mrf.mxu1 }
  0xd1   :  { %v198_v28 = vpack.c.bf16 %v172_v24, %v172_v24  ;;  %v164_v29 = vadd.f32 %v162_v25, %v152_v26 }
  0xd3   :  { %183 = vst.msk [vmem:[%s319_s7] sm:$0xf] %vm182_vm2, %v198_v28  ;;  %v173_v31 = vadd.f32 %v195_v19, %v164_v29 }
  0xd5   :  { %v199_v32 = vpack.c.bf16 %v173_v31, %v173_v31 }
  0xd7   :  { %184 = vst.msk [vmem:[%s319_s7 + $0x4] sm:$0xf] %vm182_vm2, %v199_v32 }

</bundles_post_ra>
